<compile_context>
chip_gen: v6e
topology: v6e:2x2x1
jax: 0.10.0
libtpu: 0.0.40
codegen_flags: <defaults>
</compile_context>

<pallas_src>
import functools

import jax
import jax.numpy as jnp
from jax.experimental import pallas as pl
from jax.experimental.pallas import tpu as pltpu


def _round_up(x: int, m: int) -> int:
    return ((x + m - 1) // m) * m


def _pad_lane_dim(d: int) -> int:
    # 128-aligned minimum (vreg lane width); 256-aligned when > 128 so the 256-wide MXU
    # on v6e / v7x is fully fed.  256 is also a multiple of 128, so it is fine on v5e.
    return _round_up(d, 128) if d <= 128 else _round_up(d, 256)


def _vmem_capacity_bytes() -> int:
    """Best-effort query of per-core VMEM; conservative fallback = 64 MiB (v7x)."""
    try:
        info = pltpu.get_tpu_info()
        for name in ("vmem_capacity_bytes", "vmem_bytes", "vmem_size_bytes"):
            v = getattr(info, name, None)
            if v:
                return int(v)
    except Exception:
        pass
    return 64 << 20


def _ctc_linear_kernel(x_ref, w_ref, o_ref, *, precision):
    """One output tile: (tm, D_p) @ (D_p, tn) -> (tm, tn), full-K, f32 accumulation."""
    o_ref[...] = jnp.dot(
        x_ref[...],
        w_ref[...],
        preferred_element_type=jnp.float32,
        precision=precision,
    ).astype(o_ref.dtype)


class SelfCTCGenerator:
    """Pallas-TPU forward of Self_CTC_Generator: out = audio_features @ W.T.

    Weight handling (transpose to (D, V), padding, optional bf16 cast) is hoisted to
    __init__ so repeated forward calls only pay for the pallas_call itself.

    Args:
      weight:        (V, D) array, as stored by nn.Linear (V = ctc_embed_num + 1).
      tm, tn:        row / vocab tile-size caps (adapted down to fit VMEM / shapes).
      compute_dtype: optional (e.g. jnp.bfloat16) opt-in fast path; accumulation stays
                     f32 and the output keeps the input's dtype.
      precision:     optional lax.Precision for the in-kernel dot (HIGHEST for strict
                     f32 parity at an MXU-throughput cost).
    """

    def __init__(self, weight, *, tm=512, tn=512, compute_dtype=None, precision=None):
        V, D = weight.shape
        self.V, self.D = V, D
        self.compute_dtype = compute_dtype
        self.precision = precision

        # Pre-transpose once: standard (tm,K)@(K,tn) contraction in the kernel, so Mosaic
        # never has to emit per-tile XLU transposes for a (V, K)-oriented RHS.
        w = weight.T  # (D, V)
        if compute_dtype is not None:
            w = w.astype(compute_dtype)

        D_p = _pad_lane_dim(D)
        V_p_min = _pad_lane_dim(V)
        self.D_p = D_p

        capacity = _vmem_capacity_bytes()
        # ~112 MiB budget on 128 MiB chips (v5e/v6e), ~48 MiB on v7x's 64 MiB.
        self.budget = max(capacity - (16 << 20), (capacity * 3) // 4)

        iw = jnp.dtype(w.dtype).itemsize
        ix = jnp.dtype(compute_dtype).itemsize if compute_dtype is not None else 4
        io = 4  # planning assumption (f32 output)

        tm_plan = max(16, (int(tm) // 16) * 16)  # multiple of 16 -> valid for f32 & bf16 rows

        def fits(tm_c, tn_c, resident):
            # Conservative: assume every input block (incl. the resident weight) is
            # double-buffered by the pipeline.
            w_bytes = 2 * D_p * (V_p_min if resident else tn_c) * iw
            return w_bytes + 2 * tm_c * D_p * ix + 2 * tm_c * tn_c * io <= self.budget

        if fits(tm_plan, V_p_min, resident=True):
            # Path A: whole padded weight lives in VMEM, DMA'd from HBM once per call.
            self.resident = True
            self.tn = V_p_min
            self.V_p = V_p_min
        else:
            # Path B: tile V.  The V axis is the OUTER grid dim, so each weight tile is
            # fetched once and reused across the whole M sweep (weight HBM traffic = V*D).
            self.resident = False
            tn_e = max(128, (min(int(tn), V_p_min) // 128) * 128)
            while not fits(tm_plan, tn_e, False) and tn_e > 128:
                tn_e = max(128, ((tn_e // 2) // 128) * 128)
            while not fits(tm_plan, tn_e, False) and tm_plan > 16:
                tm_plan = max(16, ((tm_plan // 2) // 16) * 16)
            # TODO(synk): for pathologically large ctc_decoder_input_dim a K-tiled
            # accumulator fallback would be needed; typical D (<= 4k) always fits full-K.
            self.tn = tn_e
            self.V_p = _round_up(V, tn_e)
        self.tm_cap = tm_plan

        if (D_p, self.V_p) != w.shape:
            w = jnp.pad(w, ((0, D_p - D), (0, self.V_p - V)))
        self.w_prepared = w  # (D_p, V_p)

    def __call__(self, audio_features):
        assert audio_features.shape[-1] == self.D, "feature dim mismatch"
        *lead, D = audio_features.shape
        out_dtype = audio_features.dtype

        x = audio_features
        if self.compute_dtype is not None:
            x = x.astype(self.compute_dtype)

        M = 1
        for s in lead:
            M *= int(s)
        x2d = x.reshape(M, D)

        # Row (sublane) granularity: 8 for 32-bit, 16 for 16-bit compute dtypes.
        row_g = 16 if jnp.dtype(x2d.dtype).itemsize == 2 else 8
        M_p0 = _round_up(M, row_g)

        tm_e = min(self.tm_cap, M_p0)
        # Guarantee >= 2 row tiles when possible so v7x megacore can shard the
        # "parallel" axis across both TensorCores (small-batch inference shapes).
        if M_p0 // tm_e < 2 and M_p0 >= 2 * row_g:
            tm_e = _round_up(pl.cdiv(M_p0, 2), row_g)
        M_p = _round_up(M_p0, tm_e)

        D_p, V_p, tn = self.D_p, self.V_p, self.tn
        if (M_p, D_p) != (M, D):
            x2d = jnp.pad(x2d, ((0, M_p - M), (0, D_p - D)))

        # Explicit VMEM budget from the actual (double-buffered) footprint.
        ix = jnp.dtype(x2d.dtype).itemsize
        iw = jnp.dtype(self.w_prepared.dtype).itemsize
        io = jnp.dtype(out_dtype).itemsize
        w_bytes = 2 * D_p * (V_p if self.resident else tn) * iw
        footprint = w_bytes + 2 * tm_e * D_p * ix + 2 * tm_e * tn * io
        vmem_limit = int(min(self.budget, max(footprint + (4 << 20), 16 << 20)))

        kernel = functools.partial(_ctc_linear_kernel, precision=self.precision)

        if self.resident:
            grid = (M_p // tm_e,)
            in_specs = [
                pl.BlockSpec((tm_e, D_p), lambda i: (i, 0)),
                pl.BlockSpec((D_p, V_p), lambda i: (0, 0)),  # constant -> single HBM fetch
            ]
            out_specs = pl.BlockSpec((tm_e, V_p), lambda i: (i, 0))
            dims = ("parallel",)
        else:
            grid = (V_p // tn, M_p // tm_e)  # V outer, M inner -> weight tile reused over M
            in_specs = [
                pl.BlockSpec((tm_e, D_p), lambda j, i: (i, 0)),
                pl.BlockSpec((D_p, tn), lambda j, i: (0, j)),
            ]
            out_specs = pl.BlockSpec((tm_e, tn), lambda j, i: (i, j))
            dims = ("parallel", "parallel")

        out2d = pl.pallas_call(
            kernel,
            out_shape=jax.ShapeDtypeStruct((M_p, V_p), out_dtype),
            grid_spec=pltpu.PrefetchScalarGridSpec(
                num_scalar_prefetch=0,
                grid=grid,
                in_specs=in_specs,
                out_specs=out_specs,
            ),
            compiler_params=pltpu.CompilerParams(
                dimension_semantics=dims,
                vmem_limit_bytes=vmem_limit,
            ),
        )(x2d, self.w_prepared)

        if (M_p, V_p) != (M, self.V):
            out2d = out2d[:M, : self.V]
        return out2d.reshape(*lead, self.V)


def self_ctc_generator_forward(audio_features, weight, **kwargs):
    """One-shot convenience wrapper (weight prep is NOT amortized across calls)."""
    return SelfCTCGenerator(weight, **kwargs)(audio_features)


if __name__ == "__main__":
    # Small, module-consistent shapes:
    #   batch=2, seq=8, ctc_decoder_input_dim=32, ctc_embed_num=127 -> V = 128
    B, T, D = 2, 8, 32
    V = 127 + 1

    key = jax.random.PRNGKey(0)
    k_x, k_w, k_x2, k_w2 = jax.random.split(key, 4)

    audio_features = jax.random.normal(k_x, (B, T, D), dtype=jnp.float32)
    bound = 1.0 / (D ** 0.5)
    weight = jax.random.uniform(k_w, (V, D), jnp.float32, -bound, bound)

    gen = SelfCTCGenerator(weight)          # weight transpose/pad hoisted here, once
    out = jax.block_until_ready(gen(audio_features))
    ref = audio_features @ weight.T
    assert out.shape == (B, T, V)
    # Tolerance covers the MXU's reduced-precision f32 passes under default precision;
    # pass precision=jax.lax.Precision.HIGHEST to SelfCTCGenerator for strict f32 parity.
    assert jnp.allclose(out, ref, atol=2e-2, rtol=2e-2), float(jnp.max(jnp.abs(out - ref)))

    # Second check: non-tile-aligned shapes exercise the padding / slicing path.
    B2, T2, D2, V2 = 2, 7, 40, 97
    x2 = jax.random.normal(k_x2, (B2, T2, D2), dtype=jnp.float32)
    w2 = jax.random.uniform(k_w2, (V2, D2), jnp.float32, -1.0 / (D2 ** 0.5), 1.0 / (D2 ** 0.5))
    out2 = jax.block_until_ready(self_ctc_generator_forward(x2, w2))
    ref2 = x2 @ w2.T
    assert out2.shape == (B2, T2, V2)
    assert jnp.allclose(out2, ref2, atol=2e-2, rtol=2e-2), float(jnp.max(jnp.abs(out2 - ref2)))

    print("KERNEL_OK")
</pallas_src>

<mosaic_0001>
module attributes {stable_mosaic.version = 11 : i64} {
  func.func @_ctc_linear_kernel(%arg0: i32, %arg1: memref<8x128xf32, #tpu.memory_space<vmem>>, %arg2: memref<128x128xf32, #tpu.memory_space<vmem>>, %arg3: memref<8x128xf32, #tpu.memory_space<vmem>>) attributes {dimension_semantics = [#tpu.dimension_semantics<parallel>], iteration_bounds = array<i64: 2>, scalar_prefetch = 0 : i64, scratch_operands = 0 : i64, tpu.core_type = #tpu.core_type<tc>, window_params = [{transform_indices = @transform_0, window_bounds = array<i64: 8, 128>}, {pipeline_mode = #tpu.pipeline_mode<synchronous>, transform_indices = @transform_1, window_bounds = array<i64: 128, 128>}, {transform_indices = @transform_2, window_bounds = array<i64: 8, 128>}]} {
    %c0 = arith.constant 0 : index
    %c0_0 = arith.constant 0 : index
    %0 = vector.load %arg1[%c0, %c0_0] : memref<8x128xf32, #tpu.memory_space<vmem>>, vector<8x128xf32>
    %c0_1 = arith.constant 0 : index
    %c0_2 = arith.constant 0 : index
    %1 = vector.load %arg2[%c0_1, %c0_2] : memref<128x128xf32, #tpu.memory_space<vmem>>, vector<128x128xf32>
    %cst = arith.constant dense<0.000000e+00> : vector<8x128xf32>
    %2 = tpu.matmul %0, %1, %cst {dimension_numbers = #tpu.dot_dimension_numbers<[1], [0], [0], [1], [0, 0, 1, 1], [], []>} : vector<8x128xf32>, vector<128x128xf32>, vector<8x128xf32> -> vector<8x128xf32>
    %c0_3 = arith.constant 0 : index
    %c0_4 = arith.constant 0 : index
    %3 = vector.load %arg3[%c0_3, %c0_4] : memref<8x128xf32, #tpu.memory_space<vmem>>, vector<8x128xf32>
    tpu.vector_store %arg3[%c0_3, %c0_4], %2 {strides = array<i32>} : memref<8x128xf32, #tpu.memory_space<vmem>>, vector<8x128xf32>,
    return
  }
  func.func @transform_0(%arg0: i32) -> (i32, i32) {
    %c0_i32 = arith.constant 0 : i32
    %c0_i32_0 = arith.constant 0 : i32
    return %arg0, %c0_i32 : i32, i32
  }
  func.func @transform_1(%arg0: i32) -> (i32, i32) {
    %c0_i32 = arith.constant 0 : i32
    %c0_i32_0 = arith.constant 0 : i32
    %c0_i32_1 = arith.constant 0 : i32
    return %c0_i32, %c0_i32_0 : i32, i32
  }
  func.func @transform_2(%arg0: i32) -> (i32, i32) {
    %c0_i32 = arith.constant 0 : i32
    %c0_i32_0 = arith.constant 0 : i32
    return %arg0, %c0_i32 : i32, i32
  }
}

</mosaic_0001>

<bundles_post_ra>
// kernel: tpu_custom_call.1
= control target key start
LH: loop header
LB: loop body
LE: loop exit
PB: predicated region body
PF: predicated region fallthrough
CT: control target
= control target key end

     0   :  { %7 = vsyncpa [#allocation3], 0  ;;  %s802_s0 = inlined_call_operand.hbm [shape: f32[16,128], index: 0, kind: input, shape index: {}]   ;;  %s803_s1 = inlined_call_operand.hbm [shape: f32[128,128], index: 1, kind: input, shape index: {}]   ;;  %s804_s2 = inlined_call_operand.hbm [shape: f32[16,128], index: 2, kind: output, shape index: {}]  }
   0x1   :  { %9 = vsyncpa [#allocation3 + $0x1], 0 }
   0x2   :  { %10 = vsyncpa [#allocation6], 0 }
   0x3   :  { %11 = vsyncpa [#allocation4], 0 }
   0x4   :  { %13 = vsyncpa [#allocation4 + $0x1], 0  ;;  %s629_s9 = smov 0   ;;  %s631_s10 = smov 0  }
   0x5   :  { %s633_s11 = smov 0   ;;  %s635_s12 = smov 0  }
   0x6 LB: > { %s650_s13 = sadd.s32 4294967295, %s605_s12   ;;  %s356_s14 = sadd.s32 4294967294, %s605_s12   ;;  %s605_s12 = sphi %s635_s12, %s826_s12   ;;  %s601_s11 = sphi %s633_s11, %s825_s11   ;;  %s597_s10 = sphi %s631_s10, %s824_s10   ;;  %s593_s9 = sphi %s629_s9, %s823_s9  }
   0x7   : > { %p39_p0 = scmp.ne.s32.totalorder %s597_s10, %s593_s9  ;;  %p805_p1 = scmp.eq.s32.totalorder %s650_s13, 0 }
   0x8   : > { %p90_p3 = scmp.eq.s32.totalorder %s356_s14, 1  ;;  %p357_p5 = scmp.ge.s32.totalorder %s605_s12, 1 }
   0x9   : > { %p659_p4 = por %p805_p1, %p39_p0  ;;  %p97_p7 = scmp.lt.s32.totalorder %s605_s12, 3 }
   0xa   : > { %p664_p6 = por %p90_p3, %p39_p0  ;;  %s607_s18 = smov [#allocation5]  }
   0xb   : > { %s809_s15 = scalar_select %p659_p4, 1, 0 }
   0xc   : > { %s810_s16 = scalar_select %p664_p6, 1, 0 }
   0xd   : > { %p669_p8 = pnand %p357_p5, %p97_p7  ;;  %s109_s19 = sshll.u32 %s607_s18, 4  ;;  %s110_s19 = int_to_ptr.vmem [resolvable:$true] %s109_s19 }
   0xe   : > { %s683_s21 = sadd.s32 1, %s605_s12   ;;  %s26_s22 = sadd.s32 1, %s601_s11 }
   0xf   : > { %s811_s17 = scalar_select %p669_p8, 1, 0 }
  0x10   : > { %p430_p9 = pneg %p669_p8  ;;  %s23_s23 = ssub.s32 %s605_s12, %s683_s21 }
  0x11   : > { %s494_s24 = scalar_lea.vmem %s110_s19, 2048  ;;  %p502_p5 = scmp.lt.s32.totalorder %s110_s19, %s110_s19 }
  0x12   : > { %p678_p11 = pnand %p430_p9, %p805_p1  ;;  %p495_p13 = scmp.ne.s32.totalorder %s110_s19, %s494_s24 }
  0x13   : > { %p503_p7 = scmp.lt.s32.totalorder %s494_s24, %s494_s24 }
  0x14   : > { %p485_p12 = pneg %p678_p11 }
  0x15   : > { %p504_p10 = por %p503_p7, %p502_p5 }
  0x16   : > { %p497_p0 = pnand %p495_p13, %p485_p12 }
  0x18   : > { %p498_p3 = pneg %p497_p0 }
  0x1a   : > { %p505_p2 = pnand %p504_p10, %p498_p3 }
  0x1c   : > { %508 = shalt.err (!%p505_p2)
}
  0x1d   : > { %s608_s25 = smov 128   ;;  %s609_s26 = smov 8  }
  0x1e   : > { %433 = dma.hbm_to_vmem [thread:$0]  (!%p678_p11), %s803_s1, 2048, %s110_s19, [#allocation6], %s608_s25, %s608_s25, %s609_s26  }
  0x1f   : > { %p24_p9 = scmp.eq.s32.totalorder %s23_s23, 0  ;;  %p33_p12 = scmp.ne.s32.totalorder %s601_s11, %s597_s10 }
  0x20   : > { %p34_p10 = scmp.eq.s32.totalorder %s605_s12, 0  ;;  %p443_p2 = scmp.lt.s32.totalorder %s605_s12, 2 }
  0x21   : > { %s700_s29 = scalar_select %p24_p9, %s601_s11, %s26_s22  }
  0x22   : > { %p35_p13 = por %p34_p10, %p33_p12  ;;  %p813_p0 = scmp.eq.s32.totalorder %s650_s13, 1 }
  0x23   : > { %s123_s3 = sand.u32 1, %s601_s11   ;;  %s361_s4 = sshll.u32 %s605_s12, 7 }
  0x24   : > { %p704_p3 = por %p813_p0, %p33_p12  ;;  %s360_s5 = sshll.u32 %s123_s3, 3 }
  0x25   : > { %s713_s8 = scalar_lea.hbm %s802_s0, %s361_s4  ;;  %s127_s14 = scalar_lea.vmem [#allocation2], %s360_s5 }
  0x26   : > { %s814_s30 = scalar_select %p704_p3, 1, 0 }
  0x27   : > { %s134_s18 = sshll.u32 %s127_s14, 4  ;;  %p715_p11 = pnand %p443_p2, %p35_p13  ;;  %s135_s18 = int_to_ptr.vmem [resolvable:$true] %s134_s18 }
  0x28   : > { %s124_s20 = scalar_lea.sflag [#allocation3], %s123_s3  ;;  %s509_s22 = scalar_lea.hbm %s713_s8, 128 }
  0x29   : > { %p510_p5 = scmp.ne.s32.totalorder %s713_s8, %s509_s22  ;;  %p511_p7 = pneg %p715_p11 }
  0x2a   : > { %s514_s25 = scalar_lea.hbm %s802_s0, 256  ;;  %p515_p10 = scmp.lt.s32.totalorder %s713_s8, %s802_s0 }
  0x2b   : > { %p512_p9 = pnand %p511_p7, %p510_p5  ;;  %p516_p2 = scmp.lt.s32.totalorder %s514_s25, %s509_s22 }
  0x2d   : > { %p513_p12 = pneg %p512_p9  ;;  %p517_p13 = por %p516_p2, %p515_p10 }
  0x2f   : > { %p518_p0 = pnand %p517_p13, %p513_p12 }
  0x31   : > { %521 = shalt.err (!%p518_p0)
}
  0x32   : > { %s522_s28 = scalar_lea.vmem %s135_s18, 128  ;;  %s610_s3 = smov [#allocation2]  }
  0x33   : > { %p523_p1 = scmp.ne.s32.totalorder %s135_s18, %s522_s28  ;;  %s527_s4 = sshll.u32 %s610_s3, 4  ;;  %s528_s4 = int_to_ptr.vmem [resolvable:$false] %s527_s4 }
  0x34   : > { %s529_s5 = scalar_lea.vmem %s528_s4, 256  ;;  %p530_p5 = scmp.lt.s32.totalorder %s135_s18, %s528_s4 }
  0x35   : > { %p525_p6 = pnand %p523_p1, %p511_p7  ;;  %p531_p9 = scmp.lt.s32.totalorder %s529_s5, %s522_s28 }
  0x37   : > { %p526_p3 = pneg %p525_p6  ;;  %p532_p4 = por %p531_p9, %p530_p5 }
  0x39   : > { %p533_p8 = pnand %p532_p4, %p526_p3 }
  0x3b   : > { %536 = shalt.err (!%p533_p8)
}
  0x3c   : > { %437 = dma.hbm_to_vmem [thread:$0]  (!%p715_p11), %s713_s8, 128, %s135_s18, %s124_s20  }
  0x3d   : > { %p816_p12 = scmp.ne.s32.totalorder %s811_s17, 0 }
  0x3e   : > { %s736_s6 = sand.u32 (!%p816_p12), 1, %s597_s10   ;;  %p817_p1 = scmp.ne.s32.totalorder (!%p816_p12), %s809_s15, 0 }
  0x3f   : > { %143 = sbr.rel (%p816_p12) target bundleno = 312 (0x138), region = 28  ;;  %s363_s7 = sshll.u32 (!%p816_p12), %s736_s6, 3 }
  0x40   : > { %s146_s14 = scalar_lea.sflag (!%p816_p12), [#allocation3], %s736_s6  ;;  %s742_s22 = scalar_lea.vmem (!%p816_p12), [#allocation2], %s363_s7 }
  0x44   : > { %580 = dma.done.wait (%p817_p1), %s146_s14, 128  }
  0x45   : > { %582 = vsyncadd (%p817_p1), %s146_s14, 4294967168  ;;  %p818_p4 = scmp.eq.s32.totalorder %s650_s13, 0 }
  0x47   : > { %584 = dma.done.wait (%p818_p4), [#allocation6], 2048   ;;  %p819_p6 = pmov %p818_p4 }
  0x48   : > { %v611_v0 = vmov 0.0   ;;  %vm612_vm0 = vmmov 0   ;;  %v190_v1 = vld [vmem:[#allocation5 + $0x78] sm:$0xff]  ;;  %v189_v2 = vld [vmem:[#allocation5 + $0x70] sm:$0xff]  ;;  %v188_v3 = vld [vmem:[#allocation5 + $0x68] sm:$0xff]  ;;  %s173_s15 = scalar_lea.vmem [#allocation7], %s363_s7 }
  0x49   : > { %586 = vsyncadd (%p819_p6), [#allocation6], 4294965248  ;;  %387 = vmatprep.subr.mxu0 %v611_v0  ;;  %419 = vmatprep.mubr.msk.f32.mxu0 %vm612_vm0, %v611_v0  ;;  %v187_v4 = vld [vmem:[#allocation5 + $0x60] sm:$0xff]  ;;  %v186_v5 = vld [vmem:[#allocation5 + $0x58] sm:$0xff]  ;;  %s276_s17 = sshll.u32 %s173_s15, 4  ;;  %s367_s8 = sshll.u32 %s650_s13, 7  ;;  %s756_s17 = int_to_ptr.vmem [resolvable:$true] %s276_s17 }
  0x4a   : > { %388 = vmatpush3.msra.mxu0 %v190_v1  ;;  %v185_v6 = vld [vmem:[#allocation5 + $0x50] sm:$0xff]  ;;  %v184_v7 = vld [vmem:[#allocation5 + $0x48] sm:$0xff]  ;;  %v183_v8 = vld [vmem:[#allocation5 + $0x40] sm:$0xff]  ;;  %s761_s20 = scalar_lea.hbm %s804_s2, %s367_s8  ;;  %s263_s23 = scalar_lea.sflag [#allocation4], %s736_s6 }
  0x4b   : > { %389 = vmatprep.subr.mxu0 %v611_v0  ;;  %v182_v9 = vld [vmem:[#allocation5 + $0x38] sm:$0xff]  ;;  %v181_v10 = vld [vmem:[#allocation5 + $0x30] sm:$0xff]  ;;  %v180_v11 = vld [vmem:[#allocation5 + $0x28] sm:$0xff]  ;;  %s537_s24 = scalar_lea.vmem %s756_s17, 128  ;;  %p820_p3 = scmp.ne.s32.totalorder %s814_s30, 0 }
  0x4c   : > { %390 = vmatpush3.msra.mxu0 %v189_v2  ;;  %v179_v12 = vld [vmem:[#allocation5 + $0x20] sm:$0xff]  ;;  %v178_v13 = vld [vmem:[#allocation5 + $0x18] sm:$0xff]  ;;  %v177_v14 = vld [vmem:[#allocation5 + $0x10] sm:$0xff]  ;;  %p538_p8 = scmp.ne.s32.totalorder %s756_s17, %s537_s24  ;;  %s613_s13 = smov [#allocation7]  }
  0x4d   : > { %391 = vmatprep.subr.mxu0 %v611_v0  ;;  %v176_v15 = vld [vmem:[#allocation5 + $0x8] sm:$0xff]  ;;  %v175_v16 = vld [vmem:[#allocation5] sm:$0xff]  ;;  %v174_v17 = vld [vmem:[%s742_s22] sm:$0xff]  ;;  %s541_s25 = sshll.u32 %s613_s13, 4  ;;  %s542_s25 = int_to_ptr.vmem [resolvable:$false] %s541_s25 }
  0x4e   : > { %392 = vmatpush3.msra.mxu0 %v188_v3  ;;  %p539_p11 = pnand %p538_p8, %p820_p3  ;;  %s543_s26 = scalar_lea.vmem %s542_s25, 256 }
  0x4f   : > { %393 = vmatprep.subr.mxu0 %v611_v0  ;;  %p544_p10 = scmp.lt.s32.totalorder %s756_s17, %s542_s25  ;;  %p545_p2 = scmp.lt.s32.totalorder %s543_s26, %s537_s24 }
  0x50   : > { %394 = vmatpush3.msra.mxu0 %v187_v4  ;;  %p540_p7 = pneg %p539_p11 }
  0x51   : > { %395 = vmatprep.subr.mxu0 %v611_v0  ;;  %p546_p13 = por %p545_p2, %p544_p10 }
  0x52   : > { %396 = vmatpush3.msra.mxu0 %v186_v5 }
  0x53   : > { %397 = vmatprep.subr.mxu0 %v611_v0  ;;  %p547_p0 = pnand %p546_p13, %p540_p7 }
  0x54   : > { %398 = vmatpush3.msra.mxu0 %v185_v6 }
  0x55   : > { %399 = vmatprep.subr.mxu0 %v611_v0 }
  0x56   : > { %400 = vmatpush3.msra.mxu0 %v184_v7 }
  0x57   : > { %401 = vmatprep.subr.mxu0 %v611_v0 }
  0x58   : > { %402 = vmatpush3.msra.mxu0 %v183_v8 }
  0x59   : > { %403 = vmatprep.subr.mxu0 %v611_v0 }
  0x5a   : > { %404 = vmatpush3.msra.mxu0 %v182_v9 }
  0x5b   : > { %405 = vmatprep.subr.mxu0 %v611_v0 }
  0x5c   : > { %406 = vmatpush3.msra.mxu0 %v181_v10 }
  0x5d   : > { %407 = vmatprep.subr.mxu0 %v611_v0 }
  0x5e   : > { %408 = vmatpush3.msra.mxu0 %v180_v11 }
  0x5f   : > { %409 = vmatprep.subr.mxu0 %v611_v0 }
  0x60   : > { %410 = vmatpush3.msra.mxu0 %v179_v12 }
  0x61   : > { %411 = vmatprep.subr.mxu0 %v611_v0 }
  0x62   : > { %412 = vmatpush3.msra.mxu0 %v178_v13 }
  0x63   : > { %413 = vmatprep.subr.mxu0 %v611_v0 }
  0x64   : > { %414 = vmatpush3.msra.mxu0 %v177_v14 }
  0x65   : > { %415 = vmatprep.subr.mxu0 %v611_v0 }
  0x66   : > { %416 = vmatpush3.msra.mxu0 %v176_v15 }
  0x67   : > { %417 = vmatprep.subr.mxu0 %v611_v0 }
  0x68   : > { %418 = vmatpush3.msra.mxu0 %v175_v16 }
  0x69   : > { %420 = vmatmul.mubr.f32.vlgmr.msra.gmra.mxu0 %v174_v17 }
 0x129   : > { %v257_v18 = vpop.f32.mrf.mxu0 }
 0x12a   : > { %261 = vst [vmem:[%s173_s15] sm:$0xff] %v257_v18 }
 0x12b   : > { %v421_v19 = vpop.f32.mrf.mxu0 }
 0x12c   : > { %550 = shalt.err (!%p547_p0)
}
 0x12d   : > { %s551_s27 = scalar_lea.hbm %s761_s20, 128  ;;  %s555_s4 = scalar_lea.hbm %s804_s2, 256 }
 0x12e   : > { %p552_p5 = scmp.ne.s32.totalorder %s761_s20, %s551_s27  ;;  %p556_p1 = scmp.lt.s32.totalorder %s761_s20, %s804_s2 }
 0x12f   : > { %p557_p4 = scmp.lt.s32.totalorder %s555_s4, %s551_s27 }
 0x130   : > { %p553_p9 = pnand %p552_p5, %p820_p3 }
 0x131   : > { %p558_p6 = por %p557_p4, %p556_p1 }
 0x132   : > { %p554_p12 = pneg %p553_p9 }
 0x134   : > { %p559_p8 = pnand %p558_p6, %p554_p12 }
 0x136   : > { %562 = shalt.err (!%p559_p8)
}
 0x137   : > { %428 = dma.vmem_to_hbm [thread:$0]  (%p820_p3), %s756_s17, 128, %s761_s20, %s263_s23  }
 0x138 PF: > { %s288_s7 = sand.u32 1, %s593_s9   ;;  %p821_p11 = scmp.ne.s32.totalorder %s810_s16, 0 }
 0x139   : > { %p822_p7 = scmp.ge.s32.totalorder %s605_s12, 2  ;;  %s289_s14 = scalar_lea.sflag [#allocation4], %s288_s7 }
 0x13b   : > { %p439_p10 = pnand %p822_p7, %p821_p11 }
 0x13d   : > { %p440_p2 = pneg %p439_p10 }
 0x13f   : > { %588 = dma.done.wait (%p440_p2), %s289_s14, 128  }
 0x140   : > { %590 = vsyncadd (%p440_p2), %s289_s14, 4294967168  ;;  %p16_p13 = scmp.ge.s32.totalorder %s683_s21, 4   ;;  %s823_s9 = smov %s597_s10 }
 0x141   : > { %s824_s10 = smov %s601_s11  ;;  %s825_s11 = smov %s700_s29 }
 0x142   : > { %s826_s12 = smov %s683_s21  ;;  %18 = sbr.rel (!%p16_p13) target bundleno = 6 (0x6), region = 77 }
 0x147   :  { %294 = vsyncpa [#allocation3], 1 }
 0x148   :  { %296 = vsyncpa [#allocation3 + $0x1], 1 }
 0x149   :  { %297 = vsyncpa [#allocation6], 1 }
 0x14a   :  { %298 = vsyncpa [#allocation4], 1 }
 0x14b   :  { %300 = vsyncpa [#allocation4 + $0x1], 1 }

</bundles_post_ra>
